<compile_context>
chip_gen: v6e
topology: v6e:2x2x1
jax: 0.10.0
libtpu: 0.0.40
codegen_flags: <defaults>
</compile_context>

<pallas_src>
import jax
import jax.numpy as jnp
from jax import lax
from jax.experimental import pallas as pl
from jax.experimental.pallas import tpu as pltpu


def _round_up(a: int, b: int) -> int:
    return (a + b - 1) // b * b


def angle_linear_kernel(x_ref, w_ref, out_ref):
    """Computes one (TN, TC) tile of cos_theta * xlen.

    x_ref  : (TN, D)  input rows (zero-padded rows are harmless, sliced off later)
    w_ref  : (D, TC)  pre-normalized weight with the /wlen divide already folded in
    out_ref: (TN, TC) cos_theta * xlen  (what AngleLinear.forward returns)
    """
    x = x_ref[...]                                      # (TN, D) f32
    w = w_ref[...]                                      # (D, TC) f32

    # Row norms: rsqrt lowers to the EUP (its own VLIW slot) -> no VPU divide/sqrt.
    sumsq = jnp.sum(x * x, axis=1, keepdims=True)       # (TN, 1)
    inv_xlen = lax.rsqrt(jnp.maximum(sumsq, 1e-30))     # guard zero / padded rows
    xlen = sumsq * inv_xlen                             # == sqrt(sumsq)

    # cos_theta = clamp((x @ ww) / xlen / wlen, -1, 1); /wlen is folded into w.
    ct = jnp.dot(x, w, preferred_element_type=jnp.float32)   # MXU
    ct = jnp.clip(ct * inv_xlen, -1.0, 1.0)

    out_ref[...] = ct * xlen


def angle_linear(x, w, *, tn=256, tc=512):
    """AngleLinear forward. x: (N, D), w: (D, C) -> (N, C) = cos_theta * xlen."""
    n, d = x.shape
    d2, c = w.shape
    assert d == d2

    x = x.astype(jnp.float32)
    w = w.astype(jnp.float32)

    # ---- hoisted, one-shot weight preparation (plain JAX, not per-tile) -----
    # ww = w.renorm(2, 1, 1e-5).mul(1e5)  -> column-wise L2 normalization.
    col_norm = jnp.sqrt(jnp.sum(w * w, axis=0, keepdims=True))
    ww = jnp.where(col_norm > 1e-5, w / col_norm, w * 1e5)
    # Fold the reference's divide-by-wlen (wlen = ||ww|| per column) into the weight.
    wlen = jnp.sqrt(jnp.sum(ww * ww, axis=0, keepdims=True))
    w_eff = ww / wlen

    # ---- pad to TPU-friendly (8, 128) granularity; pick tile sizes ----------
    tn = min(tn, _round_up(n, 8))       # multiple of 8 (sublanes)
    tc = min(tc, _round_up(c, 128))     # multiple of 128 (lanes) -> unmasked stores
    n_pad = _round_up(n, tn)
    c_pad = _round_up(c, tc)
    d_pad = _round_up(d, 128)
    # TODO(synk): for very large in_features add a K ("arbitrary") grid axis with a
    # VMEM f32 accumulator; here D stays resident per tile.

    x_p = jnp.pad(x, ((0, n_pad - n), (0, d_pad - d)))
    w_p = jnp.pad(w_eff, ((0, d_pad - d), (0, c_pad - c)))

    grid = (n_pad // tn, c_pad // tc)

    cost = pl.CostEstimate(
        flops=2 * n_pad * d_pad * c_pad,
        transcendentals=0,
        bytes_accessed=4 * (n_pad * d_pad + d_pad * c_pad + n_pad * c_pad),
    )

    out = pl.pallas_call(
        angle_linear_kernel,
        out_shape=jax.ShapeDtypeStruct((n_pad, c_pad), jnp.float32),
        grid=grid,
        in_specs=[
            pl.BlockSpec((tn, d_pad), lambda i, j: (i, 0)),   # x tile: varies with i
            pl.BlockSpec((d_pad, tc), lambda i, j: (0, j)),   # w tile: varies with j
        ],
        out_specs=pl.BlockSpec((tn, tc), lambda i, j: (i, j)),
        compiler_params=pltpu.CompilerParams(
            dimension_semantics=("parallel", "parallel"),     # megacore sharding on v7x
            vmem_limit_bytes=48 * 1024 * 1024,                # headroom under v7x's 64 MiB
        ),
        cost_estimate=cost,
    )(x_p, w_p)

    return out[:n, :c]


def init_angle_linear_weight(key, in_features, out_features):
    """weight.data.uniform_(-1, 1).renorm_(2, 1, 1e-5).mul_(1e5) -> unit-norm columns."""
    w = jax.random.uniform(key, (in_features, out_features), jnp.float32,
                           minval=-1.0, maxval=1.0)
    col_norm = jnp.sqrt(jnp.sum(w * w, axis=0, keepdims=True))
    w = jnp.where(col_norm > 1e-5, w * (1e-5 / col_norm), w) * 1e5
    return w


if __name__ == "__main__":
    key = jax.random.PRNGKey(0)
    k_x, k_w = jax.random.split(key)

    batch, in_features, out_features = 8, 32, 16
    x = jax.random.normal(k_x, (batch, in_features), jnp.float32)
    w = init_angle_linear_weight(k_w, in_features, out_features)

    out = angle_linear(x, w)
    jax.block_until_ready(out)
    assert out.shape == (batch, out_features)

    # Pure-JAX reference of the PyTorch forward (returns cos_theta * xlen).
    col_norm = jnp.sqrt(jnp.sum(w * w, axis=0, keepdims=True))
    ww = jnp.where(col_norm > 1e-5, w / col_norm, w * 1e5)
    xlen = jnp.sqrt(jnp.sum(x * x, axis=1, keepdims=True))
    wlen = jnp.sqrt(jnp.sum(ww * ww, axis=0, keepdims=True))
    ref = jnp.clip(jnp.dot(x, ww, precision=jax.lax.Precision.HIGHEST) / xlen / wlen,
                   -1.0, 1.0) * xlen
    assert jnp.allclose(out, ref, rtol=1e-3, atol=1e-3)

    print("KERNEL_OK")
</pallas_src>

<mosaic_0001>
module attributes {stable_mosaic.version = 11 : i64} {
  func.func @angle_linear_kernel(%arg0: i32, %arg1: i32, %arg2: memref<8x128xf32, #tpu.memory_space<vmem>>, %arg3: memref<128x128xf32, #tpu.memory_space<vmem>>, %arg4: memref<8x128xf32, #tpu.memory_space<vmem>>) attributes {dimension_semantics = [#tpu.dimension_semantics<parallel>, #tpu.dimension_semantics<parallel>], iteration_bounds = array<i64: 1, 1>, scalar_prefetch = 0 : i64, scratch_operands = 0 : i64, tpu.core_type = #tpu.core_type<tc>, window_params = [{transform_indices = @transform_0, window_bounds = array<i64: 8, 128>}, {transform_indices = @transform_1, window_bounds = array<i64: 128, 128>}, {transform_indices = @transform_2, window_bounds = array<i64: 8, 128>}]} {
    %c0 = arith.constant 0 : index
    %c0_0 = arith.constant 0 : index
    %0 = vector.load %arg2[%c0, %c0_0] : memref<8x128xf32, #tpu.memory_space<vmem>>, vector<8x128xf32>
    %c0_1 = arith.constant 0 : index
    %c0_2 = arith.constant 0 : index
    %1 = vector.load %arg3[%c0_1, %c0_2] : memref<128x128xf32, #tpu.memory_space<vmem>>, vector<128x128xf32>
    %2 = arith.mulf %0, %0 : vector<8x128xf32>
    %cst = arith.constant dense<0.000000e+00> : vector<8xf32>
    %3 = vector.multi_reduction <add>, %2, %cst [1] : vector<8x128xf32> to vector<8xf32>
    %4 = vector.shape_cast %3 : vector<8xf32> to vector<8x1xf32>
    %cst_3 = arith.constant 1.000000e-30 : f32
    %5 = vector.broadcast %cst_3 : f32 to vector<8x1xf32>
    %6 = arith.maximumf %4, %5 : vector<8x1xf32>
    %7 = math.rsqrt %6 : vector<8x1xf32>
    %8 = arith.mulf %4, %7 : vector<8x1xf32>
    %cst_4 = arith.constant dense<0.000000e+00> : vector<8x128xf32>
    %9 = tpu.matmul %0, %1, %cst_4 {dimension_numbers = #tpu.dot_dimension_numbers<[1], [0], [0], [1], [0, 0, 1, 1], [], []>} : vector<8x128xf32>, vector<128x128xf32>, vector<8x128xf32> -> vector<8x128xf32>
    %10 = vector.broadcast %7 : vector<8x1xf32> to vector<8x128xf32>
    %11 = arith.mulf %9, %10 : vector<8x128xf32>
    %cst_5 = arith.constant -1.000000e+00 : f32
    %cst_6 = arith.constant 1.000000e+00 : f32
    %12 = vector.broadcast %cst_5 : f32 to vector<8x128xf32>
    %13 = arith.maximumf %12, %11 : vector<8x128xf32>
    %14 = vector.broadcast %cst_6 : f32 to vector<8x128xf32>
    %15 = arith.minimumf %14, %13 : vector<8x128xf32>
    %16 = vector.broadcast %8 : vector<8x1xf32> to vector<8x128xf32>
    %17 = arith.mulf %15, %16 : vector<8x128xf32>
    %c0_7 = arith.constant 0 : index
    %c0_8 = arith.constant 0 : index
    %18 = vector.load %arg4[%c0_7, %c0_8] : memref<8x128xf32, #tpu.memory_space<vmem>>, vector<8x128xf32>
    tpu.vector_store %arg4[%c0_7, %c0_8], %17 {strides = array<i32>} : memref<8x128xf32, #tpu.memory_space<vmem>>, vector<8x128xf32>,
    return
  }
  func.func @transform_0(%arg0: i32, %arg1: i32) -> (i32, i32) {
    %c0_i32 = arith.constant 0 : i32
    %c0_i32_0 = arith.constant 0 : i32
    return %arg0, %c0_i32 : i32, i32
  }
  func.func @transform_1(%arg0: i32, %arg1: i32) -> (i32, i32) {
    %c0_i32 = arith.constant 0 : i32
    %c0_i32_0 = arith.constant 0 : i32
    return %c0_i32, %arg1 : i32, i32
  }
  func.func @transform_2(%arg0: i32, %arg1: i32) -> (i32, i32) {
    %c0_i32 = arith.constant 0 : i32
    return %arg0, %arg1 : i32, i32
  }
}

</mosaic_0001>

<bundles_post_ra>
// kernel: tpu_custom_call.1
= control target key start
LH: loop header
LB: loop body
LE: loop exit
PB: predicated region body
PF: predicated region fallthrough
CT: control target
= control target key end

     0   :  { %7 = vsyncpa [#allocation3], 0  ;;  %s311_s0 = inlined_call_operand.hbm [shape: f32[8,128], index: 0, kind: input, shape index: {}]   ;;  %s312_s1 = inlined_call_operand.hbm [shape: f32[128,128], index: 1, kind: input, shape index: {}]   ;;  %s313_s2 = inlined_call_operand.hbm [shape: f32[8,128], index: 2, kind: output, shape index: {}]  }
   0x1   :  { %8 = vsyncpa [#allocation6], 0 }
   0x2   :  { %9 = vsyncpa [#allocation4], 0  ;;  %s280_s9 = smov [#allocation2]   ;;  %s281_s11 = smov [#allocation5]  }
   0x3   :  { %s16_s10 = sshll.u32 %s280_s9, 4  ;;  %s25_s12 = sshll.u32 %s281_s11, 4  ;;  %s17_s10 = int_to_ptr.vmem [resolvable:$true] %s16_s10  ;;  %s26_s12 = int_to_ptr.vmem [resolvable:$true] %s25_s12 }
   0x4   :  { %s222_s13 = scalar_lea.vmem %s17_s10, 128  ;;  %p227_p1 = scmp.lt.s32.totalorder %s17_s10, %s17_s10 }
   0x5   :  { %p223_p0 = scmp.ne.s32.totalorder %s17_s10, %s222_s13  ;;  %p228_p2 = scmp.lt.s32.totalorder %s222_s13, %s222_s13 }
   0x7   :  { %p229_p3 = por %p228_p2, %p227_p1 }
   0x9   :  { %p230_p4 = pnand %p229_p3, %p223_p0 }
   0xb   :  { %233 = shalt.err (!%p230_p4)
}
   0xc   :  { %19 = dma.hbm_to_vmem [thread:$0]  %s311_s0, 128, %s17_s10, [#allocation3]  }
   0xd   :  { %s242_s16 = scalar_lea.vmem %s26_s12, 2048  ;;  %p247_p6 = scmp.lt.s32.totalorder %s26_s12, %s26_s12 }
   0xe   :  { %p243_p5 = scmp.ne.s32.totalorder %s26_s12, %s242_s16  ;;  %p248_p7 = scmp.lt.s32.totalorder %s242_s16, %s242_s16 }
  0x10   :  { %p249_p8 = por %p248_p7, %p247_p6 }
  0x12   :  { %p250_p9 = pnand %p249_p8, %p243_p5 }
  0x14   :  { %253 = shalt.err (!%p250_p9)
}
  0x15   :  { %s282_s17 = smov 128   ;;  %s283_s18 = smov 8  }
  0x16   :  { %31 = dma.hbm_to_vmem [thread:$0]  %s312_s1, 2048, %s26_s12, [#allocation6], %s282_s17, %s282_s17, %s283_s18  }
  0x17   :  { %274 = dma.done.wait [#allocation3], 128  }
  0x18   :  { %275 = vsyncadd [#allocation3], 4294967168 }
  0x19   :  { %276 = dma.done.wait [#allocation6], 2048  }
  0x1a   :  { %277 = vsyncadd [#allocation6], 4294965248  ;;  %v284_v0 = vmov 0.0   ;;  %vm285_vm0 = vmmov 0   ;;  %v54_v1 = vld [vmem:[#allocation5 + $0x78] sm:$0xff]  ;;  %v53_v2 = vld [vmem:[#allocation5 + $0x70] sm:$0xff] }
  0x1b   :  { %170 = vmatprep.subr.mxu0 %v284_v0  ;;  %202 = vmatprep.mubr.msk.f32.mxu0 %vm285_vm0, %v284_v0  ;;  %v52_v3 = vld [vmem:[#allocation5 + $0x68] sm:$0xff]  ;;  %v51_v4 = vld [vmem:[#allocation5 + $0x60] sm:$0xff]  ;;  %v38_v5 = vld [vmem:[#allocation2] sm:$0xff]  ;;  %s286_s0 = smov [#allocation7]  }
  0x1c   :  { %171 = vmatpush3.msra.mxu0 %v54_v1  ;;  %v50_v6 = vld [vmem:[#allocation5 + $0x58] sm:$0xff]  ;;  %v55_v7 = vmul.f32 %v38_v5, %v38_v5  ;;  %v49_v8 = vld [vmem:[#allocation5 + $0x50] sm:$0xff]  ;;  %v48_v9 = vld [vmem:[#allocation5 + $0x48] sm:$0xff]  ;;  %s142_s1 = sshll.u32 %s286_s0, 4  ;;  %s143_s1 = int_to_ptr.vmem [resolvable:$true] %s142_s1 }
  0x1d   :  { %172 = vmatprep.subr.mxu0 %v284_v0  ;;  %v47_v10 = vld [vmem:[#allocation5 + $0x40] sm:$0xff]  ;;  %v46_v11 = vld [vmem:[#allocation5 + $0x38] sm:$0xff]  ;;  %v45_v12 = vld [vmem:[#allocation5 + $0x30] sm:$0xff]  ;;  %s254_s21 = scalar_lea.vmem %s143_s1, 128  ;;  %p259_p11 = scmp.lt.s32.totalorder %s143_s1, %s143_s1 }
  0x1e   :  { %173 = vmatpush3.msra.mxu0 %v53_v2  ;;  %56 = vadd.xlane.f32.xlu0 %v55_v7  ;;  %v44_v13 = vld [vmem:[#allocation5 + $0x28] sm:$0xff]  ;;  %v43_v14 = vld [vmem:[#allocation5 + $0x20] sm:$0xff]  ;;  %v42_v15 = vld [vmem:[#allocation5 + $0x18] sm:$0xff]  ;;  %p255_p10 = scmp.ne.s32.totalorder %s143_s1, %s254_s21  ;;  %p260_p12 = scmp.lt.s32.totalorder %s254_s21, %s254_s21 }
  0x1f   :  { %174 = vmatprep.subr.mxu0 %v284_v0  ;;  %v41_v16 = vld [vmem:[#allocation5 + $0x10] sm:$0xff]  ;;  %v40_v17 = vld [vmem:[#allocation5 + $0x8] sm:$0xff]  ;;  %v39_v18 = vld [vmem:[#allocation5] sm:$0xff] }
  0x20   :  { %175 = vmatpush3.msra.mxu0 %v52_v3  ;;  %p261_p13 = por %p260_p12, %p259_p11 }
  0x21   :  { %176 = vmatprep.subr.mxu0 %v284_v0 }
  0x22   :  { %177 = vmatpush3.msra.mxu0 %v51_v4  ;;  %p262_p0 = pnand %p261_p13, %p255_p10 }
  0x23   :  { %178 = vmatprep.subr.mxu0 %v284_v0 }
  0x24   :  { %179 = vmatpush3.msra.mxu0 %v50_v6 }
  0x25   :  { %180 = vmatprep.subr.mxu0 %v284_v0 }
  0x26   :  { %181 = vmatpush3.msra.mxu0 %v49_v8 }
  0x27   :  { %182 = vmatprep.subr.mxu0 %v284_v0 }
  0x28   :  { %183 = vmatpush3.msra.mxu0 %v48_v9 }
  0x29   :  { %184 = vmatprep.subr.mxu0 %v284_v0 }
  0x2a   :  { %185 = vmatpush3.msra.mxu0 %v47_v10 }
  0x2b   :  { %186 = vmatprep.subr.mxu0 %v284_v0 }
  0x2c   :  { %187 = vmatpush3.msra.mxu0 %v46_v11 }
  0x2d   :  { %188 = vmatprep.subr.mxu0 %v284_v0 }
  0x2e   :  { %189 = vmatpush3.msra.mxu0 %v45_v12 }
  0x2f   :  { %190 = vmatprep.subr.mxu0 %v284_v0 }
  0x30   :  { %191 = vmatpush3.msra.mxu0 %v44_v13 }
  0x31   :  { %192 = vmatprep.subr.mxu0 %v284_v0 }
  0x32   :  { %193 = vmatpush3.msra.mxu0 %v43_v14 }
  0x33   :  { %194 = vmatprep.subr.mxu0 %v284_v0 }
  0x34   :  { %195 = vmatpush3.msra.mxu0 %v42_v15 }
  0x35   :  { %196 = vmatprep.subr.mxu0 %v284_v0 }
  0x36   :  { %197 = vmatpush3.msra.mxu0 %v41_v16 }
  0x37   :  { %198 = vmatprep.subr.mxu0 %v284_v0 }
  0x38   :  { %199 = vmatpush3.msra.mxu0 %v40_v17 }
  0x39   :  { %200 = vmatprep.subr.mxu0 %v284_v0 }
  0x3a   :  { %201 = vmatpush3.msra.mxu0 %v39_v18 }
  0x3b   :  { %203 = vmatmul.mubr.f32.vlgmr.msra.gmra.mxu0 %v38_v5 }
  0xa7   :  { %v57_v19 = vpop.xlane.xlu0 %56 }
  0xa8   :  { %v58_v20 = vmax.f32 %v57_v19, 1e-30 }
  0xaa   :  { %212 = vrsqrt.f32 %v58_v20 }
  0xb7   :  { %v213_v21 = vpop.eup %212 }
  0xb8   :  { %v60_v25 = vmul.f32 %v213_v21, %v57_v19 }
  0xfb   :  { %v127_v22 = vpop.f32.mrf.mxu0 }
  0xfc   :  { %v131_v23 = vmul.f32 %v213_v21, %v127_v22 }
  0xfd   :  { %v204_v24 = vpop.f32.mrf.mxu0 }
  0xfe   :  { %v152_v26 = vclamps-f32 %v131_v23, 1.0 }
 0x100   :  { %v134_v27 = vmul.f32 %v152_v26, %v60_v25 }
 0x102   :  { %135 = vst [vmem:[#allocation7] sm:$0xff] %v134_v27 }
 0x103   :  { %265 = shalt.err (!%p262_p0)
}
 0x104   :  { %145 = dma.vmem_to_hbm [thread:$0]  %s143_s1, 128, %s313_s2, [#allocation4]  }
 0x105   :  { %278 = dma.done.wait [#allocation4], 128  }
 0x106   :  { %279 = vsyncadd [#allocation4], 4294967168 }
 0x107   :  { %149 = vsyncpa [#allocation3], 1 }
 0x108   :  { %150 = vsyncpa [#allocation6], 1 }
 0x109   :  { %151 = vsyncpa [#allocation4], 1 }

</bundles_post_ra>
